<compile_context>
chip_gen: v7x
topology: tpu7x:2x2x1
jax: 0.10.0
libtpu: 0.0.40
codegen_flags: <defaults>
</compile_context>

<pallas_src>
import functools

import jax
import jax.numpy as jnp
from jax.experimental import pallas as pl
from jax.experimental.pallas import tpu as pltpu

# ---------------- demo dims (small, consistent with the module) --------------
BATCH = 8
INPUT_DIM = 256          # stand-in for the module's input_dim=5000
HIDDEN_DIM = 64          # real module hidden_dim=64 -> 2H = 128 lanes
OUTPUT_DIM = 2
FC_PAD = 128             # pad fc output to a full lane group (lane-dense vst)
LANE = 128


def _round_up(x, m):
    return ((x + m - 1) // m) * m


def lstm_classifier_kernel(x_ref, w0_ref, w1fc_ref, b_ref, out_ref, *,
                           g_cols, fc_pad):
    """One grid step: a block_b-row slab of the batch through the full model.

    Gate columns per layer: [i | g | o], each group g_cols wide (multiple of
    128) and internally laid out [fwd | bwd | zero-pad], so
    h = o * tanh(i * g) comes out pre-concatenated as [h_fwd | h_bwd | 0...]
    with whole-vreg lane slices and no concatenates.  f gate dropped
    (f * c_prev == 0 for zero initial state).
    """
    gc3 = 3 * g_cols

    def bidir_cell(x_bf, w, bias):
        # MXU in bf16, f32 accumulation; gate math stays f32 (v5e-safe).
        gates = jnp.dot(x_bf, w, preferred_element_type=jnp.float32) + bias
        i = jax.nn.sigmoid(gates[:, 0 * g_cols:1 * g_cols])
        g = jnp.tanh(gates[:, 1 * g_cols:2 * g_cols])
        o = jax.nn.sigmoid(gates[:, 2 * g_cols:3 * g_cols])
        return o * jnp.tanh(i * g)          # f32; padded lanes are exactly 0

    # No-op if the producer already feeds bf16 x.
    x_bf = x_ref[...].astype(jnp.bfloat16)

    # layer 0 (fwd+bwd fused into one matmul)
    h0 = bidir_cell(x_bf, w0_ref[...], b_ref[:, 0:gc3])
    # layer 1 (fwd+bwd fused); w1 and the fc weight share K = g_cols and live
    # in a single operand -> static lane-aligned views.
    h1 = bidir_cell(h0.astype(jnp.bfloat16), w1fc_ref[:, 0:gc3],
                    b_ref[:, gc3:2 * gc3])

    # hn_cat = cat(hn[-2], hn[-1]) == [h1_fwd | h1_bwd] as laid out.
    # dropout: identity (eval mode).  fc padded to fc_pad lanes (dense store).
    out_ref[...] = (jnp.dot(h1.astype(jnp.bfloat16),
                            w1fc_ref[:, gc3:gc3 + fc_pad],
                            preferred_element_type=jnp.float32)
                    + b_ref[:, 2 * gc3:2 * gc3 + fc_pad])


def _fuse_layer(params, fwd, bwd, H, g_cols, in_rows):
    """Fused (in_rows, 3*g_cols) bf16 weight and (1, 3*g_cols) f32 bias.

    PyTorch W_ih row order is [i, f, g, o] * H; the f block is dropped
    (c_prev == 0).  Each gate group is [fwd | bwd | zero-pad to g_cols];
    input rows are zero-padded from the true input width up to `in_rows`.
    """
    h2 = 2 * H

    def w_gates(name):
        w = params[name]
        return w[0:H], w[2 * H:3 * H], w[3 * H:4 * H]

    def b_gates(d):
        b = params[f"b_ih_{d}"] + params[f"b_hh_{d}"]
        return b[0:H], b[2 * H:3 * H], b[3 * H:4 * H]

    i_f, g_f, o_f = w_gates(f"w_ih_{fwd}")
    i_b, g_b, o_b = w_gates(f"w_ih_{bwd}")
    d_in = i_f.shape[1]
    wpad = jnp.zeros((g_cols - h2, d_in), jnp.float32)
    w = jnp.concatenate([i_f, i_b, wpad, g_f, g_b, wpad, o_f, o_b, wpad],
                        axis=0).T                                 # (d_in, 3*g_cols)
    if in_rows > d_in:
        w = jnp.concatenate(
            [w, jnp.zeros((in_rows - d_in, 3 * g_cols), jnp.float32)], axis=0)

    bi_f, bg_f, bo_f = b_gates(fwd)
    bi_b, bg_b, bo_b = b_gates(bwd)
    bpad = jnp.zeros((g_cols - h2,), jnp.float32)
    b = jnp.concatenate(
        [bi_f, bi_b, bpad, bg_f, bg_b, bpad, bo_f, bo_b, bpad])[None, :]
    return w.astype(jnp.bfloat16), b.astype(jnp.float32)


def _prepare_operands(params, D, H, g_cols, fc_pad):
    """Build the 3 fused weight operands (w0, w1+fc, all biases)."""
    w0, b0 = _fuse_layer(params, "l0", "l0r", H, g_cols, in_rows=D)
    w1, b1 = _fuse_layer(params, "l1", "l1r", H, g_cols, in_rows=g_cols)

    # fc head: rows padded 2H -> g_cols, cols padded to fc_pad lanes.
    wfc = jnp.zeros((g_cols, fc_pad), jnp.float32)
    wfc = wfc.at[:2 * H, :OUTPUT_DIM].set(params["w_fc"].T).astype(jnp.bfloat16)
    bfc = jnp.zeros((1, fc_pad), jnp.float32).at[:, :OUTPUT_DIM].set(params["b_fc"])

    w1fc = jnp.concatenate([w1, wfc], axis=1)       # (g_cols, 3*g_cols + fc_pad)
    b_all = jnp.concatenate([b0, b1, bfc], axis=1)  # (1, 6*g_cols + fc_pad)
    return w0, w1fc, b_all


def lstm_classifier_forward(x, params):
    B, D = x.shape
    H = HIDDEN_DIM
    g_cols = _round_up(2 * H, LANE)        # 128 for hidden_dim=64
    w0, w1fc, b_all = _prepare_operands(params, D, H, g_cols, FC_PAD)

    # Batch tile: big tiles amortize the ~0.35 us/step overhead and fill the
    # MXU rows.  512 keeps the double-buffered x tile within v7x's 64 MiB
    # physical VMEM at the real input_dim=5000 (v6e's 128 MiB could go higher).
    block_b = B if B <= 512 else 512
    grid = (pl.cdiv(B, block_b),)

    # Raise the scoped-VMEM limit only when the footprint exceeds the smallest
    # (v5e, 16 MiB) default; cap safely below v7x's 64 MiB physical VMEM.
    x_bytes = 2 * block_b * D * x.dtype.itemsize            # double-buffered x
    w_bytes = w0.size * 2 + w1fc.size * 2 + b_all.size * 4  # single-buffered
    o_bytes = 2 * block_b * FC_PAD * 4                      # double-buffered out
    needed = x_bytes + w_bytes + o_bytes
    vmem_limit = None
    if needed > (16 << 20):
        vmem_limit = min(int(needed * 1.5) + (2 << 20), 48 << 20)

    def const_spec(shape):
        # Constant-index weight operand: single-buffered (the block never
        # changes, so double-buffering would only waste VMEM better spent on
        # a larger x tile).
        return pl.BlockSpec(shape, lambda i: (0, 0),
                            pipeline_mode=pl.Buffered(1))

    kernel = functools.partial(lstm_classifier_kernel,
                               g_cols=g_cols, fc_pad=FC_PAD)
    out = pl.pallas_call(
        kernel,
        out_shape=jax.ShapeDtypeStruct((B, FC_PAD), jnp.float32),
        grid=grid,
        in_specs=[
            pl.BlockSpec((block_b, D), lambda i: (i, 0)),    # x, tiled on batch
            const_spec(w0.shape),
            const_spec(w1fc.shape),
            const_spec(b_all.shape),
        ],
        out_specs=pl.BlockSpec((block_b, FC_PAD), lambda i: (i, 0)),
        # "parallel" lets v7x's two TensorCores split the batch grid once it
        # has >= 2 steps; at the demo batch (grid=(1,)) one core simply idles
        # (splitting B=8 into 4-row blocks would violate the 8-sublane rule).
        compiler_params=pltpu.CompilerParams(
            dimension_semantics=("parallel",),
            vmem_limit_bytes=vmem_limit),
    )(x, w0, w1fc, b_all)
    return out[:, :OUTPUT_DIM]


def init_params(key):
    """Deterministic synthetic parameters (PyTorch LSTM/Linear shapes)."""
    H, D, O = HIDDEN_DIM, INPUT_DIM, OUTPUT_DIM
    shapes = {
        # layer 0 forward / reverse
        "w_ih_l0":  (4 * H, D),     "b_ih_l0":  (4 * H,), "b_hh_l0":  (4 * H,),
        "w_ih_l0r": (4 * H, D),     "b_ih_l0r": (4 * H,), "b_hh_l0r": (4 * H,),
        # layer 1 forward / reverse (input size = 2H from bidirectional layer 0)
        "w_ih_l1":  (4 * H, 2 * H), "b_ih_l1":  (4 * H,), "b_hh_l1":  (4 * H,),
        "w_ih_l1r": (4 * H, 2 * H), "b_ih_l1r": (4 * H,), "b_hh_l1r": (4 * H,),
        # fc head
        "w_fc": (O, 2 * H), "b_fc": (O,),
    }
    params = {}
    keys = jax.random.split(key, len(shapes))
    scale = 1.0 / jnp.sqrt(jnp.float32(H))
    for k, (name, shp) in zip(keys, sorted(shapes.items())):
        params[name] = jax.random.uniform(k, shp, jnp.float32, -scale, scale)
    return params


def reference_forward(x, params):
    """Pure-JAX reference (mirrors the kernel's bf16 MXU-input quantization)."""
    H = HIDDEN_DIM
    f32 = jnp.float32

    def q(a):  # bf16 round-trip: same quantization the kernel feeds the MXU
        return a.astype(jnp.bfloat16).astype(f32)

    def cell(inp, w, b_ih, b_hh):
        g = q(inp) @ q(w).T + b_ih + b_hh
        i = jax.nn.sigmoid(g[:, 0 * H:1 * H])
        gg = jnp.tanh(g[:, 2 * H:3 * H])
        o = jax.nn.sigmoid(g[:, 3 * H:4 * H])
        return o * jnp.tanh(i * gg)     # f gate * c_prev == 0 dropped

    h0f = cell(x, params["w_ih_l0"], params["b_ih_l0"], params["b_hh_l0"])
    h0b = cell(x, params["w_ih_l0r"], params["b_ih_l0r"], params["b_hh_l0r"])
    x1 = jnp.concatenate([h0f, h0b], axis=1)
    h1f = cell(x1, params["w_ih_l1"], params["b_ih_l1"], params["b_hh_l1"])
    h1b = cell(x1, params["w_ih_l1r"], params["b_ih_l1r"], params["b_hh_l1r"])
    hn_cat = jnp.concatenate([h1f, h1b], axis=1)
    return q(hn_cat) @ q(params["w_fc"]).T + params["b_fc"]


if __name__ == "__main__":
    # Note: at this demo size (B=8, grid=(1,)) the kernel is launch/DMA-
    # descriptor bound; the tiling/operand-count choices above target the real
    # configuration (input_dim=5000, large batch).
    key = jax.random.PRNGKey(0)
    k_x, k_p = jax.random.split(key)
    x = jax.random.normal(k_x, (BATCH, INPUT_DIM), jnp.float32)
    params = init_params(k_p)

    out = jax.block_until_ready(lstm_classifier_forward(x, params))
    ref = reference_forward(x, params)

    assert out.shape == (BATCH, OUTPUT_DIM)
    err = float(jnp.max(jnp.abs(out - ref)))
    assert jnp.allclose(out, ref, atol=5e-3, rtol=5e-3), err
    print("KERNEL_OK")
</pallas_src>

<mosaic_0001>
module attributes {stable_mosaic.version = 11 : i64} {
  func.func @lstm_classifier_kernel(%arg0: i32, %arg1: memref<8x256xf32, #tpu.memory_space<vmem>>, %arg2: memref<256x384xbf16, #tpu.memory_space<vmem>>, %arg3: memref<128x512xbf16, #tpu.memory_space<vmem>>, %arg4: memref<1x896xf32, #tpu.memory_space<vmem>>, %arg5: memref<8x128xf32, #tpu.memory_space<vmem>>) attributes {dimension_semantics = [#tpu.dimension_semantics<parallel>], iteration_bounds = array<i64: 1>, scalar_prefetch = 0 : i64, scratch_operands = 0 : i64, tpu.core_type = #tpu.core_type<tc>, window_params = [{transform_indices = @transform_0, window_bounds = array<i64: 8, 256>}, {pipeline_mode = #tpu.pipeline_mode<synchronous>, transform_indices = @transform_1, window_bounds = array<i64: 256, 384>}, {pipeline_mode = #tpu.pipeline_mode<synchronous>, transform_indices = @transform_2, window_bounds = array<i64: 128, 512>}, {pipeline_mode = #tpu.pipeline_mode<synchronous>, transform_indices = @transform_3, window_bounds = array<i64: 1, 896>}, {transform_indices = @transform_4, window_bounds = array<i64: 8, 128>}]} {
    %c0 = arith.constant 0 : index
    %c0_0 = arith.constant 0 : index
    %0 = vector.load %arg1[%c0, %c0_0] : memref<8x256xf32, #tpu.memory_space<vmem>>, vector<8x256xf32>
    %1 = arith.truncf %0 : vector<8x256xf32> to vector<8x256xbf16>
    %c0_1 = arith.constant 0 : index
    %c0_2 = arith.constant 0 : index
    %2 = vector.load %arg2[%c0_1, %c0_2] : memref<256x384xbf16, #tpu.memory_space<vmem>>, vector<256x384xbf16>
    %c0_3 = arith.constant 0 : index
    %c0_4 = arith.constant 0 : index
    %3 = vector.load %arg4[%c0_3, %c0_4] : memref<1x896xf32, #tpu.memory_space<vmem>>, vector<1x384xf32>
    %cst = arith.constant dense<0.000000e+00> : vector<8x384xf32>
    %4 = tpu.matmul %1, %2, %cst {dimension_numbers = #tpu.dot_dimension_numbers<[1], [0], [0], [1], [0, 0, 1, 1], [], []>} : vector<8x256xbf16>, vector<256x384xbf16>, vector<8x384xf32> -> vector<8x384xf32>
    %5 = vector.broadcast %3 : vector<1x384xf32> to vector<8x384xf32>
    %6 = arith.addf %4, %5 : vector<8x384xf32>
    %7 = vector.extract_strided_slice %6 {offsets = [0, 0], sizes = [8, 128], strides = [1, 1]} : vector<8x384xf32> to vector<8x128xf32>
    %8 = arith.negf %7 : vector<8x128xf32>
    %9 = math.exp %8 : vector<8x128xf32>
    %cst_5 = arith.constant 1.000000e+00 : f32
    %10 = vector.broadcast %cst_5 : f32 to vector<8x128xf32>
    %11 = arith.addf %10, %9 : vector<8x128xf32>
    %12 = arith.divf %10, %11 : vector<8x128xf32>
    %13 = vector.extract_strided_slice %6 {offsets = [0, 128], sizes = [8, 128], strides = [1, 1]} : vector<8x384xf32> to vector<8x128xf32>
    %14 = math.tanh %13 : vector<8x128xf32>
    %15 = vector.extract_strided_slice %6 {offsets = [0, 256], sizes = [8, 128], strides = [1, 1]} : vector<8x384xf32> to vector<8x128xf32>
    %16 = arith.negf %15 : vector<8x128xf32>
    %17 = math.exp %16 : vector<8x128xf32>
    %cst_6 = arith.constant 1.000000e+00 : f32
    %18 = vector.broadcast %cst_6 : f32 to vector<8x128xf32>
    %19 = arith.addf %18, %17 : vector<8x128xf32>
    %20 = arith.divf %18, %19 : vector<8x128xf32>
    %21 = arith.mulf %12, %14 : vector<8x128xf32>
    %22 = math.tanh %21 : vector<8x128xf32>
    %23 = arith.mulf %20, %22 : vector<8x128xf32>
    %24 = arith.truncf %23 : vector<8x128xf32> to vector<8x128xbf16>
    %c0_7 = arith.constant 0 : index
    %c0_8 = arith.constant 0 : index
    %25 = vector.load %arg3[%c0_7, %c0_8] : memref<128x512xbf16, #tpu.memory_space<vmem>>, vector<128x384xbf16>
    %c0_9 = arith.constant 0 : index
    %c384 = arith.constant 384 : index
    %26 = vector.load %arg4[%c0_9, %c384] : memref<1x896xf32, #tpu.memory_space<vmem>>, vector<1x384xf32>
    %cst_10 = arith.constant dense<0.000000e+00> : vector<8x384xf32>
    %27 = tpu.matmul %24, %25, %cst_10 {dimension_numbers = #tpu.dot_dimension_numbers<[1], [0], [0], [1], [0, 0, 1, 1], [], []>} : vector<8x128xbf16>, vector<128x384xbf16>, vector<8x384xf32> -> vector<8x384xf32>
    %28 = vector.broadcast %26 : vector<1x384xf32> to vector<8x384xf32>
    %29 = arith.addf %27, %28 : vector<8x384xf32>
    %30 = vector.extract_strided_slice %29 {offsets = [0, 0], sizes = [8, 128], strides = [1, 1]} : vector<8x384xf32> to vector<8x128xf32>
    %31 = arith.negf %30 : vector<8x128xf32>
    %32 = math.exp %31 : vector<8x128xf32>
    %cst_11 = arith.constant 1.000000e+00 : f32
    %33 = vector.broadcast %cst_11 : f32 to vector<8x128xf32>
    %34 = arith.addf %33, %32 : vector<8x128xf32>
    %35 = arith.divf %33, %34 : vector<8x128xf32>
    %36 = vector.extract_strided_slice %29 {offsets = [0, 128], sizes = [8, 128], strides = [1, 1]} : vector<8x384xf32> to vector<8x128xf32>
    %37 = math.tanh %36 : vector<8x128xf32>
    %38 = vector.extract_strided_slice %29 {offsets = [0, 256], sizes = [8, 128], strides = [1, 1]} : vector<8x384xf32> to vector<8x128xf32>
    %39 = arith.negf %38 : vector<8x128xf32>
    %40 = math.exp %39 : vector<8x128xf32>
    %cst_12 = arith.constant 1.000000e+00 : f32
    %41 = vector.broadcast %cst_12 : f32 to vector<8x128xf32>
    %42 = arith.addf %41, %40 : vector<8x128xf32>
    %43 = arith.divf %41, %42 : vector<8x128xf32>
    %44 = arith.mulf %35, %37 : vector<8x128xf32>
    %45 = math.tanh %44 : vector<8x128xf32>
    %46 = arith.mulf %43, %45 : vector<8x128xf32>
    %47 = arith.truncf %46 : vector<8x128xf32> to vector<8x128xbf16>
    %c0_13 = arith.constant 0 : index
    %c384_14 = arith.constant 384 : index
    %48 = vector.load %arg3[%c0_13, %c384_14] : memref<128x512xbf16, #tpu.memory_space<vmem>>, vector<128x128xbf16>
    %cst_15 = arith.constant dense<0.000000e+00> : vector<8x128xf32>
    %49 = tpu.matmul %47, %48, %cst_15 {dimension_numbers = #tpu.dot_dimension_numbers<[1], [0], [0], [1], [0, 0, 1, 1], [], []>} : vector<8x128xbf16>, vector<128x128xbf16>, vector<8x128xf32> -> vector<8x128xf32>
    %c0_16 = arith.constant 0 : index
    %c768 = arith.constant 768 : index
    %50 = vector.load %arg4[%c0_16, %c768] : memref<1x896xf32, #tpu.memory_space<vmem>>, vector<1x128xf32>
    %51 = vector.broadcast %50 : vector<1x128xf32> to vector<8x128xf32>
    %52 = arith.addf %49, %51 : vector<8x128xf32>
    %c0_17 = arith.constant 0 : index
    %c0_18 = arith.constant 0 : index
    %53 = vector.load %arg5[%c0_17, %c0_18] : memref<8x128xf32, #tpu.memory_space<vmem>>, vector<8x128xf32>
    tpu.vector_store %arg5[%c0_17, %c0_18], %52 {strides = array<i32>} : memref<8x128xf32, #tpu.memory_space<vmem>>, vector<8x128xf32>,
    return
  }
  func.func @transform_0(%arg0: i32) -> (i32, i32) {
    %c0_i32 = arith.constant 0 : i32
    %c0_i32_0 = arith.constant 0 : i32
    return %arg0, %c0_i32 : i32, i32
  }
  func.func @transform_1(%arg0: i32) -> (i32, i32) {
    %c0_i32 = arith.constant 0 : i32
    %c0_i32_0 = arith.constant 0 : i32
    %c0_i32_1 = arith.constant 0 : i32
    return %c0_i32, %c0_i32_0 : i32, i32
  }
  func.func @transform_2(%arg0: i32) -> (i32, i32) {
    %c0_i32 = arith.constant 0 : i32
    %c0_i32_0 = arith.constant 0 : i32
    %c0_i32_1 = arith.constant 0 : i32
    return %c0_i32, %c0_i32_0 : i32, i32
  }
  func.func @transform_3(%arg0: i32) -> (i32, i32) {
    %c0_i32 = arith.constant 0 : i32
    %c0_i32_0 = arith.constant 0 : i32
    %c0_i32_1 = arith.constant 0 : i32
    return %c0_i32, %c0_i32_0 : i32, i32
  }
  func.func @transform_4(%arg0: i32) -> (i32, i32) {
    %c0_i32 = arith.constant 0 : i32
    %c0_i32_0 = arith.constant 0 : i32
    return %arg0, %c0_i32 : i32, i32
  }
}

</mosaic_0001>

<bundles_post_ra>
// kernel: tpu_custom_call.1
= control target key start
LH: loop header
LB: loop body
LE: loop exit
PB: predicated region body
PF: predicated region fallthrough
CT: control target
= control target key end

     0   :  { %9 = vsyncpa [#allocation3], 0  ;;  %s1416_s0 = inlined_call_operand.hbm [shape: f32[8,256], index: 0, kind: input, shape index: {}]   ;;  %s1417_s1 = inlined_call_operand.hbm [shape: bf16[256,384], index: 1, kind: input, shape index: {}]   ;;  %s1418_s2 = inlined_call_operand.hbm [shape: bf16[128,512], index: 2, kind: input, shape index: {}]   ;;  %s1419_s3 = inlined_call_operand.vmem [shape: f32[1,896], index: 3, kind: input, shape index: {}]   ;;  %s1420_s4 = inlined_call_operand.hbm [shape: f32[8,128], index: 4, kind: output, shape index: {}]  }
   0x1   :  { %10 = vsyncpa [#allocation6], 0 }
   0x2   :  { %11 = vsyncpa [#allocation4], 0  ;;  %s1298_s15 = smov [#allocation5]   ;;  %s1204_s19 = scalar_lea.hbm %s1417_s1, 6144 }
   0x3   :  { %s27_s16 = sshll.u32 %s1298_s15, 4  ;;  %p1205_p0 = scmp.ne.s32.totalorder %s1417_s1, %s1204_s19  ;;  %s28_s16 = int_to_ptr.vmem [resolvable:$true] %s27_s16 }
   0x4   :  { %p1208_p1 = scmp.lt.u32.totalorder %s1204_s19, %s1417_s1 }
   0x6   :  { %p1210_p2 = pnand %p1208_p1, %p1205_p0 }
   0x8   :  { %1213 = shalt.err (!%p1210_p2)
}
   0x9   :  { %s1214_s24 = scalar_lea.vmem %s28_s16, 6144  ;;  %p1219_p4 = scmp.lt.s32.totalorder %s28_s16, %s28_s16 }
   0xa   :  { %p1215_p3 = scmp.ne.s32.totalorder %s28_s16, %s1214_s24  ;;  %p1220_p5 = scmp.lt.s32.totalorder %s1214_s24, %s1214_s24 }
   0xc   :  { %p1221_p6 = por %p1220_p5, %p1219_p4 }
   0xe   :  { %p1222_p7 = pnand %p1221_p6, %p1215_p3 }
  0x10   :  { %1225 = shalt.err (!%p1222_p7)
}
  0x11   :  { %s1299_s25 = smov 192   ;;  %s1300_s26 = smov 12  }
  0x12   :  { %33 = dma.hbm_to_vmem [thread:$0]  %s1417_s1, 6144, %s28_s16, [#allocation6], %s1299_s25, %s1299_s25, %s1300_s26  }
  0x13   :  { %s1301_s29 = smov [#allocation2]   ;;  %s1302_s5 = smov [#allocation7]  }
  0x14   :  { %s18_s30 = sshll.u32 %s1301_s29, 4  ;;  %s39_s6 = sshll.u32 %s1302_s5, 4  ;;  %s19_s30 = int_to_ptr.vmem [resolvable:$true] %s18_s30  ;;  %s40_s6 = int_to_ptr.vmem [resolvable:$true] %s39_s6 }
  0x15   :  { %s1226_s9 = scalar_lea.hbm %s1416_s0, 256 }
  0x16   :  { %p1227_p8 = scmp.ne.s32.totalorder %s1416_s0, %s1226_s9  ;;  %p1230_p9 = scmp.lt.u32.totalorder %s1226_s9, %s1416_s0 }
  0x18   :  { %p1232_p10 = pnand %p1230_p9, %p1227_p8 }
  0x1a   :  { %1235 = shalt.err (!%p1232_p10)
}
  0x1b   :  { %s1236_s1 = scalar_lea.vmem %s19_s30, 256  ;;  %p1241_p12 = scmp.lt.s32.totalorder %s19_s30, %s19_s30 }
  0x1c   :  { %p1237_p11 = scmp.ne.s32.totalorder %s19_s30, %s1236_s1  ;;  %p1242_p13 = scmp.lt.s32.totalorder %s1236_s1, %s1236_s1 }
  0x1e   :  { %p1243_p0 = por %p1242_p13, %p1241_p12 }
  0x20   :  { %p1244_p1 = pnand %p1243_p0, %p1237_p11 }
  0x22   :  { %1247 = shalt.err (!%p1244_p1)
}
  0x23   :  { %21 = dma.hbm_to_vmem [thread:$0]  %s1416_s0, 256, %s19_s30, [#allocation3]  }
  0x24   :  { %s1248_s18 = scalar_lea.hbm %s1418_s2, 4096 }
  0x25   :  { %p1249_p2 = scmp.ne.s32.totalorder %s1418_s2, %s1248_s18  ;;  %p1252_p3 = scmp.lt.u32.totalorder %s1248_s18, %s1418_s2 }
  0x27   :  { %p1254_p4 = pnand %p1252_p3, %p1249_p2 }
  0x29   :  { %1257 = shalt.err (!%p1254_p4)
}
  0x2a   :  { %s1258_s23 = scalar_lea.vmem %s40_s6, 4096  ;;  %p1263_p6 = scmp.lt.s32.totalorder %s40_s6, %s40_s6 }
  0x2b   :  { %p1259_p5 = scmp.ne.s32.totalorder %s40_s6, %s1258_s23  ;;  %p1264_p7 = scmp.lt.s32.totalorder %s1258_s23, %s1258_s23 }
  0x2d   :  { %p1265_p8 = por %p1264_p7, %p1263_p6 }
  0x2f   :  { %p1266_p9 = pnand %p1265_p8, %p1259_p5 }
  0x31   :  { %1269 = shalt.err (!%p1266_p9)
}
  0x32   :  { %s1303_s0 = smov 256   ;;  %s1304_s24 = smov 16  }
  0x33   :  { %45 = dma.hbm_to_vmem [thread:$0]  %s1418_s2, 4096, %s40_s6, [#allocation6], %s1303_s0, %s1303_s0, %s1304_s24  }
  0x34   :  { %1292 = dma.done.wait [#allocation3], 256  }
  0x35   :  { %1293 = vsyncadd [#allocation3], 4294967040 }
  0x36   :  { %1294 = dma.done.wait [#allocation6], 10240  }
  0x37   :  { %1295 = vsyncadd [#allocation6], 4294957056  ;;  %v1076_v0 = vld [vmem:[#allocation5 + $0x4] ss:$12 sps:$4 sm:$0xff]   ;;  %v1078_v1 = vld [vmem:[#allocation5] ss:$12 sps:$4 sm:$0xff]  }
  0x38   :  { %399 = vmatprep.subr.bf16.mxu0 %v1076_v0  ;;  %v1079_v2 = vld [vmem:[#allocation5 + $0x1c] ss:$12 sps:$4 sm:$0xff]   ;;  %v1081_v3 = vld [vmem:[#allocation5 + $0x18] ss:$12 sps:$4 sm:$0xff]   ;;  %v1082_v4 = vld [vmem:[#allocation5 + $0x34] ss:$12 sps:$4 sm:$0xff]  }
  0x39   :  { %400 = vmatpush1.bf16.msra.mxu0 %v1078_v1  ;;  %v1084_v5 = vld [vmem:[#allocation5 + $0x30] ss:$12 sps:$4 sm:$0xff]   ;;  %v1085_v6 = vld [vmem:[#allocation5 + $0x4c] ss:$12 sps:$4 sm:$0xff]   ;;  %v1087_v7 = vld [vmem:[#allocation5 + $0x48] ss:$12 sps:$4 sm:$0xff]  }
  0x3a   :  { %401 = vmatprep.subr.bf16.mxu0 %v1079_v2  ;;  %v1088_v8 = vld [vmem:[#allocation5 + $0x64] ss:$12 sps:$4 sm:$0xff]   ;;  %v1106_v9 = vld [vmem:[#allocation5 + $0xc8] ss:$12 sps:$4 sm:$0xff]   ;;  %v1090_v10 = vld [vmem:[#allocation5 + $0x60] ss:$12 sps:$4 sm:$0xff]  }
  0x3b   :  { %v1091_v11 = vld [vmem:[#allocation5 + $0x7c] ss:$12 sps:$4 sm:$0xff]   ;;  %985 = vmatprep.subr.bf16.mxu1 %v1106_v9  ;;  %v1111_v13 = vld [vmem:[#allocation5 + $0xe0] ss:$12 sps:$4 sm:$0xff]   ;;  %v1093_v14 = vld [vmem:[#allocation5 + $0x78] ss:$12 sps:$4 sm:$0xff]  }
  0x3c   :  { %v1109_v12 = vld [vmem:[#allocation5 + $0x8] ss:$12 sps:$4 sm:$0xff]   ;;  %v1114_v16 = vld [vmem:[#allocation5 + $0x20] ss:$12 sps:$4 sm:$0xff]   ;;  %v1116_v17 = vld [vmem:[#allocation5 + $0xf8] ss:$12 sps:$4 sm:$0xff]  }
  0x3d   :  { %402 = vmatpush1.bf16.msra.mxu0 %v1081_v3  ;;  %986 = vmatpush3.bf16.msra.mxu1 %v1109_v12  ;;  %v1094_v15 = vld [vmem:[#allocation5 + $0x94] ss:$12 sps:$4 sm:$0xff]   ;;  %v1096_v18 = vld [vmem:[#allocation5 + $0x90] ss:$12 sps:$4 sm:$0xff]   ;;  %v1119_v19 = vld [vmem:[#allocation5 + $0x38] ss:$12 sps:$4 sm:$0xff]  }
  0x3e   :  { %403 = vmatprep.subr.bf16.mxu0 %v1082_v4  ;;  %987 = vmatprep.subr.bf16.mxu1 %v1111_v13  ;;  %v1097_v20 = vld [vmem:[#allocation5 + $0xac] ss:$12 sps:$4 sm:$0xff]   ;;  %v1121_v21 = vld [vmem:[#allocation5 + $0x110] ss:$12 sps:$4 sm:$0xff]   ;;  %v1099_v22 = vld [vmem:[#allocation5 + $0xa8] ss:$12 sps:$4 sm:$0xff]  }
  0x3f   :  { %v1124_v23 = vld [vmem:[#allocation5 + $0x50] ss:$12 sps:$4 sm:$0xff]   ;;  %v1126_v24 = vld [vmem:[#allocation5 + $0x128] ss:$12 sps:$4 sm:$0xff]   ;;  %v1102_v26 = vld [vmem:[#allocation5 + $0xc0] ss:$12 sps:$4 sm:$0xff]  }
  0x40   :  { %v1100_v25 = vld [vmem:[#allocation5 + $0xc4] ss:$12 sps:$4 sm:$0xff]   ;;  %v1129_v27 = vld [vmem:[#allocation5 + $0x68] ss:$12 sps:$4 sm:$0xff]   ;;  %v1131_v28 = vld [vmem:[#allocation5 + $0x140] ss:$12 sps:$4 sm:$0xff]  }
  0x41   :  { %404 = vmatpush1.bf16.msra.mxu0 %v1084_v5  ;;  %988 = vmatpush3.bf16.msra.mxu1 %v1114_v16  ;;  %v1103_v29 = vld [vmem:[#allocation5 + $0xdc] ss:$12 sps:$4 sm:$0xff]   ;;  %v1105_v31 = vld [vmem:[#allocation5 + $0xd8] ss:$12 sps:$4 sm:$0xff]   ;;  %v1134_v32 = vld [vmem:[#allocation5 + $0x80] ss:$12 sps:$4 sm:$0xff]   ;;  %v128_v16 = vlaneseq }
  0x42   :  { %405 = vmatprep.subr.bf16.mxu0 %v1085_v6  ;;  %989 = vmatprep.subr.bf16.mxu1 %v1116_v17  ;;  %v59_v30 = vld [vmem:[#allocation2 + $0x8] sm:$0xff]  ;;  %v1107_v35 = vld [vmem:[#allocation5 + $0xf4] ss:$12 sps:$4 sm:$0xff]   ;;  %v1117_v42 = vld [vmem:[#allocation5 + $0x124] ss:$12 sps:$4 sm:$0xff]   ;;  %v1305_v55 = vmov 0.0  }
  0x43   :  { %v61_v33 = vpack.c.bf16 %v59_v30, %v59_v30  ;;  %v1136_v34 = vld [vmem:[#allocation5 + $0x158] ss:$12 sps:$4 sm:$0xff]   ;;  %v1110_v36 = vld [vmem:[#allocation5 + $0xf0] ss:$12 sps:$4 sm:$0xff]   ;;  %v1115_v41 = vld [vmem:[#allocation5 + $0x108] ss:$12 sps:$4 sm:$0xff]  }
  0x44   :  { %v1137_v37 = vld [vmem:[#allocation5 + $0x98] ss:$12 sps:$4 sm:$0xff]   ;;  %v1138_v39 = vld [vmem:[#allocation5 + $0x170] ss:$12 sps:$4 sm:$0xff]   ;;  %v1120_v44 = vld [vmem:[#allocation5 + $0x120] ss:$12 sps:$4 sm:$0xff]  }
  0x45   :  { %406 = vmatpush1.bf16.msra.mxu0 %v1087_v7  ;;  %990 = vmatpush3.bf16.msra.mxu1 %v1119_v19  ;;  %v1112_v38 = vld [vmem:[#allocation5 + $0x10c] ss:$12 sps:$4 sm:$0xff]   ;;  %v1139_v40 = vld [vmem:[#allocation5 + $0xb0] ss:$12 sps:$4 sm:$0xff]   ;;  %v1127_v48 = vld [vmem:[#allocation5 + $0x154] ss:$12 sps:$4 sm:$0xff]  }
  0x46   :  { %407 = vmatprep.subr.bf16.mxu0 %v1088_v8  ;;  %991 = vmatprep.subr.bf16.mxu1 %v1121_v21  ;;  %v58_v43 = vld [vmem:[#allocation2] sm:$0xff]  ;;  %v1122_v45 = vld [vmem:[#allocation5 + $0x13c] ss:$12 sps:$4 sm:$0xff]   ;;  %v1125_v47 = vld [vmem:[#allocation5 + $0x138] ss:$12 sps:$4 sm:$0xff]   ;;  %vm1307_vm0 = vmmov 0  }
  0x47   :  { %431 = vmatprep.mubr.bf16.mxu0 %v61_v33  ;;  %472 = vmatprep.mubr.bf16.mxu1 %v61_v33  ;;  %v60_v46 = vpack.c.bf16 %v58_v43, %v58_v43  ;;  %v1130_v49 = vld [vmem:[#allocation5 + $0x150] ss:$12 sps:$4 sm:$0xff]   ;;  %v1132_v50 = vld [vmem:[#allocation5 + $0x16c] ss:$12 sps:$4 sm:$0xff]   ;;  %v1135_v51 = vld [vmem:[#allocation5 + $0x168] ss:$12 sps:$4 sm:$0xff]  }
  0x48   :  { %v1142_v52 = vld [vmem:[#allocation7 + $0x4] ss:$16 sps:$4 sm:$0xff]   ;;  %v1140_v53 = vld [vmem:[#allocation7] ss:$16 sps:$4 sm:$0xff]   ;;  %v1143_v54 = vld [vmem:[#allocation7 + $0x8] ss:$16 sps:$4 sm:$0xff]  }
  0x49   :  { %408 = vmatpush1.bf16.msra.mxu0 %v1090_v10  ;;  %992 = vmatpush3.bf16.msra.mxu1 %v1124_v23  ;;  %v1146_v56 = vld [vmem:[#allocation7 + $0x24] ss:$16 sps:$4 sm:$0xff]   ;;  %v1144_v57 = vld [vmem:[#allocation7 + $0x20] ss:$16 sps:$4 sm:$0xff]   ;;  %v1147_v58 = vld [vmem:[#allocation7 + $0x28] ss:$16 sps:$4 sm:$0xff]  }
  0x4a   :  { %409 = vmatprep.subr.bf16.mxu0 %v1091_v11  ;;  %993 = vmatprep.subr.bf16.mxu1 %v1126_v24  ;;  %v1150_v59 = vld [vmem:[#allocation7 + $0x44] ss:$16 sps:$4 sm:$0xff]   ;;  %v1148_v60 = vld [vmem:[#allocation7 + $0x40] ss:$16 sps:$4 sm:$0xff]   ;;  %v1151_v61 = vld [vmem:[#allocation7 + $0x48] ss:$16 sps:$4 sm:$0xff]  }
  0x4b   :  { %v1154_v62 = vld [vmem:[#allocation7 + $0x64] ss:$16 sps:$4 sm:$0xff]   ;;  %v1152_v63 = vld [vmem:[#allocation7 + $0x60] ss:$16 sps:$4 sm:$0xff]   ;;  %v1155_v0 = vld [vmem:[#allocation7 + $0x68] ss:$16 sps:$4 sm:$0xff]  }
  0x4c   :  { %v1158_v1 = vld [vmem:[#allocation7 + $0x84] ss:$16 sps:$4 sm:$0xff]   ;;  %v1156_v2 = vld [vmem:[#allocation7 + $0x80] ss:$16 sps:$4 sm:$0xff]   ;;  %v1159_v3 = vld [vmem:[#allocation7 + $0x88] ss:$16 sps:$4 sm:$0xff]  }
  0x4d   :  { %410 = vmatpush1.bf16.msra.mxu0 %v1093_v14  ;;  %994 = vmatpush3.bf16.msra.mxu1 %v1129_v27  ;;  %v1160_v4 = vld [vmem:[#allocation7 + $0xa0] ss:$16 sps:$4 sm:$0xff]   ;;  %v1162_v5 = vld [vmem:[#allocation7 + $0xa4] ss:$16 sps:$4 sm:$0xff]   ;;  %v1163_v6 = vld [vmem:[#allocation7 + $0xa8] ss:$16 sps:$4 sm:$0xff]  }
  0x4e   :  { %411 = vmatprep.subr.bf16.mxu0 %v1094_v15  ;;  %995 = vmatprep.subr.bf16.mxu1 %v1131_v28  ;;  %v1166_v7 = vld [vmem:[#allocation7 + $0xc4] ss:$16 sps:$4 sm:$0xff]   ;;  %v1164_v8 = vld [vmem:[#allocation7 + $0xc0] ss:$16 sps:$4 sm:$0xff]   ;;  %v1167_v9 = vld [vmem:[#allocation7 + $0xc8] ss:$16 sps:$4 sm:$0xff]  }
  0x4f   :  { %v1170_v10 = vld [vmem:[#allocation7 + $0xe4] ss:$16 sps:$4 sm:$0xff]   ;;  %v1306_v11 = vmov 0   ;;  %v1168_v12 = vld [vmem:[#allocation7 + $0xe0] ss:$16 sps:$4 sm:$0xff]   ;;  %s1308_s6 = smov [#allocation8]  }
  0x50   :  { %v1171_v13 = vld [vmem:[#allocation7 + $0xe8] ss:$16 sps:$4 sm:$0xff]   ;;  %s890_s7 = sshll.u32 %s1308_s6, 4  ;;  %s891_s7 = int_to_ptr.vmem [resolvable:$true] %s890_s7 }
  0x51   :  { %412 = vmatpush1.bf16.msra.mxu0 %v1096_v18  ;;  %996 = vmatpush3.bf16.msra.mxu1 %v1134_v32  ;;  %s1270_s8 = scalar_lea.vmem %s891_s7, 128  ;;  %p1275_p11 = scmp.lt.s32.totalorder %s891_s7, %s891_s7 }
  0x52   :  { %413 = vmatprep.subr.bf16.mxu0 %v1097_v20  ;;  %997 = vmatprep.subr.bf16.mxu1 %v1136_v34  ;;  %v1381_v20 = vshrl.u32 %v128_v16, 7  ;;  %p1271_p10 = scmp.ne.s32.totalorder %s891_s7, %s1270_s8  ;;  %p1276_p12 = scmp.lt.s32.totalorder %s1270_s8, %s1270_s8 }
  0x54   :  { %v130_v21 = vsub.s32 0, %v1381_v20  ;;  %v138_v23 = vsub.s32 2, %v1381_v20  ;;  %v134_v33 = vsub.s32 1, %v1381_v20  ;;  %v976_v20 = vld [vmem:[%s1419_s3 + $0x6] ss:$0 sm:$0xff]  ;;  %p1277_p13 = por %p1276_p12, %p1275_p11 }
  0x55   :  { %414 = vmatpush1.bf16.msra.mxu0 %v1099_v22  ;;  %998 = vmatpush3.bf16.msra.mxu1 %v1137_v37  ;;  %v126_v22 = vld [vmem:[%s1419_s3] sm:$0x7] }
  0x56   :  { %415 = vmatprep.subr.bf16.mxu0 %v1100_v25  ;;  %999 = vmatprep.subr.bf16.mxu1 %v1138_v39  ;;  %v131_v24 = vrot.slane %v126_v22, %v130_v21  ;;  %p1278_p0 = pnand %p1277_p13, %p1271_p10 }
  0x59   :  { %416 = vmatpush1.bf16.msra.mxu0 %v1102_v26  ;;  %1000 = vmatpush3.bf16.msra.mxu1 %v1139_v40  ;;  %v139_v26 = vrot.slane %v126_v22, %v138_v23 }
  0x5a   :  { %417 = vmatprep.subr.bf16.mxu0 %v1103_v29  ;;  %674 = vmatprep.subr.bf16.mxu1 %v1142_v52  ;;  %v1176_v52 = vld [vmem:[#allocation7 + $0x8c] ss:$16 sps:$4 sm:$0xff]  }
  0x5c   :  { %473 = vmatmul.mubr.bf16.vlgmr.msra.gmra.mrb[0].mxu1 %v60_v46 }
  0x5d   :  { %418 = vmatpush1.bf16.msra.mxu0 %v1105_v31  ;;  %675 = vmatpush1.bf16.msra.mxu1 %v1140_v53  ;;  %v1177_v53 = vld [vmem:[#allocation7 + $0xac] ss:$16 sps:$4 sm:$0xff]  }
  0x5e   :  { %419 = vmatprep.subr.bf16.mxu0 %v1107_v35  ;;  %676 = vmatprep.subr.bf16.mxu1 %v1146_v56  ;;  %v135_v35 = vrot.slane %v126_v22, %v134_v33  ;;  %v1179_v56 = vld [vmem:[#allocation7 + $0xec] ss:$16 sps:$4 sm:$0xff]  }
  0x5f   :  { %706 = vmatprep.mubr.bf16.mxu1 %v1306_v11 }
  0x61   :  { %420 = vmatpush1.bf16.msra.mxu0 %v1110_v36  ;;  %677 = vmatpush1.bf16.msra.mxu1 %v1144_v57  ;;  %v529_v57 = vld [vmem:[%s1419_s3 + $0x3] sm:$0x7] }
  0x62   :  { %421 = vmatprep.subr.bf16.mxu0 %v1112_v38  ;;  %678 = vmatprep.subr.bf16.mxu1 %v1150_v59 }
  0x65   :  { %422 = vmatpush1.bf16.msra.mxu0 %v1115_v41  ;;  %679 = vmatpush1.bf16.msra.mxu1 %v1148_v60 }
  0x66   :  { %423 = vmatprep.subr.bf16.mxu0 %v1117_v42  ;;  %680 = vmatprep.subr.bf16.mxu1 %v1154_v62  ;;  %v542_v62 = vrot.slane %v529_v57, %v138_v23 }
  0x69   :  { %424 = vmatpush1.bf16.msra.mxu0 %v1120_v44  ;;  %681 = vmatpush1.bf16.msra.mxu1 %v1152_v63 }
  0x6a   :  { %425 = vmatprep.subr.bf16.mxu0 %v1122_v45  ;;  %682 = vmatprep.subr.bf16.mxu1 %v1158_v1 }
  0x6d   :  { %426 = vmatpush1.bf16.msra.mxu0 %v1125_v47  ;;  %683 = vmatpush1.bf16.msra.mxu1 %v1156_v2 }
  0x6e   :  { %427 = vmatprep.subr.bf16.mxu0 %v1127_v48  ;;  %684 = vmatprep.subr.bf16.mxu1 %v1162_v5  ;;  %v1172_v48 = vld [vmem:[#allocation7 + $0xc] ss:$16 sps:$4 sm:$0xff]  }
  0x71   :  { %428 = vmatpush1.bf16.msra.mxu0 %v1130_v49  ;;  %685 = vmatpush1.bf16.msra.mxu1 %v1160_v4  ;;  %v1173_v49 = vld [vmem:[#allocation7 + $0x2c] ss:$16 sps:$4 sm:$0xff]  }
  0x72   :  { %429 = vmatprep.subr.bf16.mxu0 %v1132_v50  ;;  %686 = vmatprep.subr.bf16.mxu1 %v1166_v7  ;;  %v1174_v50 = vld [vmem:[#allocation7 + $0x4c] ss:$16 sps:$4 sm:$0xff]   ;;  %v538_v7 = vrot.slane %v529_v57, %v134_v33 }
  0x75   :  { %430 = vmatpush1.bf16.msra.mxu0 %v1135_v51  ;;  %687 = vmatpush1.bf16.msra.mxu1 %v1164_v8  ;;  %v1175_v51 = vld [vmem:[#allocation7 + $0x6c] ss:$16 sps:$4 sm:$0xff]  }
  0x76   :  { %1025 = vmatprep.subr.bf16.mxu0 %v1305_v55  ;;  %688 = vmatprep.subr.bf16.mxu1 %v1170_v10 }
  0x78   :  { %432 = vmatmul.mubr.bf16.vlgmr.msra.gmra.mrb[0].mxu0 %v60_v46 }
  0x79   :  { %1026 = vmatpush3.bf16.msra.mxu0 %v1143_v54  ;;  %1041 = vmatprep.mubr.msk.bf16.mxu0 %vm1307_vm0, %v1305_v55  ;;  %v1178_v54 = vld [vmem:[#allocation7 + $0xcc] ss:$16 sps:$4 sm:$0xff]  }
  0x7a   :  { %1027 = vmatprep.subr.bf16.mxu0 %v1305_v55  ;;  %689 = vmatpush1.bf16.msra.mxu1 %v1168_v12 }
  0x7b   :  { %1045 = vmatprep.subr.bf16.mxu1 %v1305_v55 }
  0x7d   :  { %1028 = vmatpush3.bf16.msra.mxu0 %v1147_v58  ;;  %v534_v58 = vrot.slane %v529_v57, %v130_v21 }
  0x7e   :  { %1029 = vmatprep.subr.bf16.mxu0 %v1305_v55 }
  0x81   :  { %1030 = vmatpush3.bf16.msra.mxu0 %v1151_v61 }
  0x82   :  { %1031 = vmatprep.subr.bf16.mxu0 %v1305_v55 }
  0x85   :  { %1032 = vmatpush3.bf16.msra.mxu0 %v1155_v0 }
  0x86   :  { %1033 = vmatprep.subr.bf16.mxu0 %v1305_v55 }
  0x89   :  { %1034 = vmatpush3.bf16.msra.mxu0 %v1159_v3 }
  0x8a   :  { %1035 = vmatprep.subr.bf16.mxu0 %v1305_v55 }
  0x8d   :  { %1036 = vmatpush3.bf16.msra.mxu0 %v1163_v6 }
  0x8e   :  { %1037 = vmatprep.subr.bf16.mxu0 %v1305_v55 }
  0x91   :  { %1038 = vmatpush3.bf16.msra.mxu0 %v1167_v9 }
  0x92   :  { %1039 = vmatprep.subr.bf16.mxu0 %v1305_v55 }
  0x95   :  { %1040 = vmatpush3.bf16.msra.mxu0 %v1171_v13 }
 0x12f   :  { %v1001_v14 = vpop.f32.mrb[0].mxu1 }
 0x130   :  { %v1002_v15 = vpop.f32.mrb[1].mxu1 }
 0x131   :  { %v1003_v17 = vadd.f32 %v1002_v15, %v1001_v14  ;;  %v1004_v18 = vpop.f32.mrb[2].mxu1 }
 0x132   :  { %v1005_v19 = vpop.f32.mrb[3].mxu1 }
 0x133   :  { %v475_v32 = vadd.f32 %v1003_v17, %v139_v26 }
 0x135   :  { %v949_v34 = vmul.f32 -1.442695, %v475_v32 }
 0x14b   :  { %v433_v25 = vpop.f32.mrb[0].mxu0 }
 0x14c   :  { %v434_v27 = vadd.f32 %v433_v25, %v131_v24  ;;  %v435_v28 = vpop.f32.mrb[1].mxu0 }
 0x14d   :  { %v437_v29 = vpop.f32.mrb[2].mxu0  ;;  %v436_v36 = vadd.f32 %v435_v28, %v135_v35 }
 0x14e   :  { %v948_v30 = vmul.f32 -1.442695, %v434_v27  ;;  %v438_v31 = vpop.f32.mrb[3].mxu0 }
 0x150   :  { %1180 = vpow2.f32 %v948_v30 }
 0x151   :  { %1182 = vpow2.f32 %v949_v34 }
 0x152   :  { %1184 = vtanh.f32 %v436_v36 }
 0x15a   :  { %v1181_v37 = vpop.eup %1180 }
 0x15b   :  { %v483_v38 = vadd.f32 1.0, %v1181_v37  ;;  %v1183_v39 = vpop.eup %1182 }
 0x15c   :  { %v490_v40 = vadd.f32 1.0, %v1183_v39  ;;  %v1185_v41 = vpop.eup %1184 }
 0x15d   :  { %1186 = vrcp.f32 %v483_v38 }
 0x15e   :  { %1188 = vrcp.f32 %v490_v40 }
 0x167   :  { %v1187_v42 = vpop.eup %1186 }
 0x168   :  { %v493_v43 = vmul.f32 %v1187_v42, %v1185_v41  ;;  %v1189_v44 = vpop.eup %1188 }
 0x16a   :  { %1190 = vtanh.f32 %v493_v43 }
 0x174   :  { %v1191_v45 = vpop.eup %1190 }
 0x175   :  { %v495_v46 = vmul.f32 %v1191_v45, %v1189_v44 }
 0x177   :  { %v496_v47 = vpack.c.bf16 %v495_v46, %v495_v46 }
 0x179   :  { %707 = vmatmul.mubr.bf16.vlgmr.msra.gmra.mrb[4].mxu1 %v496_v47  ;;  %1042 = vmatmul.mubr.bf16.vlgmr.msra.gmra.mrb[4].mxu0 %v496_v47 }
 0x17a   :  { %1061 = vmatprep.mubr.msk.bf16.mxu1 %vm1307_vm0, %v1305_v55  ;;  %1046 = vmatpush3.bf16.msra.mxu1 %v1172_v48 }
 0x17b   :  { %1047 = vmatprep.subr.bf16.mxu1 %v1305_v55 }
 0x17e   :  { %1048 = vmatpush3.bf16.msra.mxu1 %v1173_v49 }
 0x17f   :  { %1049 = vmatprep.subr.bf16.mxu1 %v1305_v55 }
 0x182   :  { %1050 = vmatpush3.bf16.msra.mxu1 %v1174_v50 }
 0x183   :  { %1051 = vmatprep.subr.bf16.mxu1 %v1305_v55 }
 0x186   :  { %1052 = vmatpush3.bf16.msra.mxu1 %v1175_v51 }
 0x187   :  { %1053 = vmatprep.subr.bf16.mxu1 %v1305_v55 }
 0x18a   :  { %1054 = vmatpush3.bf16.msra.mxu1 %v1176_v52 }
 0x18b   :  { %1055 = vmatprep.subr.bf16.mxu1 %v1305_v55 }
 0x18e   :  { %1056 = vmatpush3.bf16.msra.mxu1 %v1177_v53 }
 0x18f   :  { %1057 = vmatprep.subr.bf16.mxu1 %v1305_v55 }
 0x192   :  { %1058 = vmatpush3.bf16.msra.mxu1 %v1178_v54 }
 0x193   :  { %1059 = vmatprep.subr.bf16.mxu1 %v1305_v55 }
 0x196   :  { %1060 = vmatpush3.bf16.msra.mxu1 %v1179_v56 }
 0x24c   :  { %v708_v59 = vpop.f32.mrb[4].mxu1  ;;  %v749_v60 = vpop.f32.mrb[4].mxu0 }
 0x24d   :  { %v709_v61 = vadd.f32 %v708_v59, %v534_v58  ;;  %v710_v63 = vpop.f32.mrb[5].mxu1  ;;  %v1043_v0 = vpop.f32.mrb[5].mxu0  ;;  %v750_v6 = vadd.f32 %v749_v60, %v542_v62 }
 0x24e   :  { %v712_v1 = vpop.f32.mrb[6].mxu1  ;;  %v752_v2 = vpop.f32.mrb[6].mxu0  ;;  %v711_v8 = vadd.f32 %v710_v63, %v538_v7 }
 0x24f   :  { %v974_v3 = vmul.f32 -1.442695, %v709_v61  ;;  %v713_v4 = vpop.f32.mrb[7].mxu1  ;;  %v1044_v5 = vpop.f32.mrb[7].mxu0  ;;  %v975_v55 = vmul.f32 -1.442695, %v750_v6 }
 0x251   :  { %1192 = vpow2.f32 %v974_v3 }
 0x252   :  { %1194 = vpow2.f32 %v975_v55 }
 0x253   :  { %1196 = vtanh.f32 %v711_v8 }
 0x25b   :  { %v1193_v9 = vpop.eup %1192 }
 0x25c   :  { %v758_v10 = vadd.f32 1.0, %v1193_v9  ;;  %v1195_v11 = vpop.eup %1194 }
 0x25d   :  { %v765_v12 = vadd.f32 1.0, %v1195_v11  ;;  %v1197_v13 = vpop.eup %1196 }
 0x25e   :  { %1198 = vrcp.f32 %v758_v10 }
 0x25f   :  { %1200 = vrcp.f32 %v765_v12 }
 0x268   :  { %v1199_v14 = vpop.eup %1198 }
 0x269   :  { %v768_v15 = vmul.f32 %v1199_v14, %v1197_v13  ;;  %v1201_v16 = vpop.eup %1200 }
 0x26b   :  { %1202 = vtanh.f32 %v768_v15 }
 0x275   :  { %v1203_v17 = vpop.eup %1202 }
 0x276   :  { %v770_v18 = vmul.f32 %v1203_v17, %v1201_v16 }
 0x278   :  { %v771_v19 = vpack.c.bf16 %v770_v18, %v770_v18 }
 0x27a   :  { %1062 = vmatmul.mubr.bf16.vlgmr.msra.gmra.mrb[8].mxu1 %v771_v19 }
 0x34d   :  { %v877_v21 = vpop.f32.mrb[8].mxu1 }
 0x34e   :  { %v878_v22 = vadd.f32 %v976_v20, %v877_v21  ;;  %v1063_v23 = vpop.f32.mrb[9].mxu1 }
 0x34f   :  { %v880_v24 = vpop.f32.mrb[10].mxu1 }
 0x350   :  { %883 = vst [vmem:[#allocation8] sm:$0xff] %v878_v22  ;;  %v1064_v25 = vpop.f32.mrb[11].mxu1 }
 0x351   :  { %1281 = shalt.err (!%p1278_p0)
}
 0x352   :  { %s1282_s3 = scalar_lea.hbm %s1420_s4, 128 }
 0x353   :  { %p1283_p1 = scmp.ne.s32.totalorder %s1420_s4, %s1282_s3  ;;  %p1286_p2 = scmp.lt.u32.totalorder %s1282_s3, %s1420_s4 }
 0x355   :  { %p1288_p3 = pnand %p1286_p2, %p1283_p1 }
 0x357   :  { %1291 = shalt.err (!%p1288_p3)
}
 0x358   :  { %893 = dma.vmem_to_hbm [thread:$0]  %s891_s7, 128, %s1420_s4, [#allocation4]  }
 0x359   :  { %1296 = dma.done.wait [#allocation4], 128  }
 0x35a   :  { %1297 = vsyncadd [#allocation4], 4294967168 }
 0x35b   :  { %897 = vsyncpa [#allocation3], 1 }
 0x35c   :  { %898 = vsyncpa [#allocation6], 1 }
 0x35d   :  { %899 = vsyncpa [#allocation4], 1 }

</bundles_post_ra>
